<compile_context>
chip_gen: v5e
topology: v5e:2x2
jax: 0.10.0
libtpu: 0.0.40
codegen_flags: <defaults>
</compile_context>

<pallas_src>
import jax
import jax.numpy as jnp
from jax.experimental import pallas as pl
from jax.experimental.pallas import tpu as pltpu


# ----------------------------- kernel --------------------------------------


def _patch_embed_kernel(x_ref, w_ref, b_ref, pos_ref, o_ref, acc_ref):
    # grid = (B, Np/tm, D/tn, K/tk); reduction axis (K) is last.
    k = pl.program_id(3)

    @pl.when(k == 0)
    def _():
        acc_ref[...] = jnp.zeros_like(acc_ref)

    acc_ref[...] += jnp.dot(x_ref[...], w_ref[...],
                            preferred_element_type=jnp.float32)

    @pl.when(k == pl.num_programs(3) - 1)
    def _():
        # Fused epilogue: conv bias + position embedding, one lane-dense store.
        o_ref[...] = (acc_ref[...] + b_ref[...] + pos_ref[...]).astype(o_ref.dtype)


# ----------------------------- wrapper --------------------------------------


def _pick_tile(dim, candidates):
    """Largest candidate that evenly divides `dim`; otherwise the full dim."""
    for c in candidates:
        if c <= dim and dim % c == 0:
            return c
    return dim


def siglip_vision_embeddings(pixel_values, params, patch_size):
    """pixel_values: (B, C, H, W) NCHW, like the PyTorch module."""
    B, C, H, W = pixel_values.shape
    P = patch_size
    Hp, Wp = H // P, W // P
    Np = Hp * Wp
    K = C * P * P
    w = params["w_patch"]                                 # (D, C, P, P)
    D = w.shape[0]

    # ---- glue: patchify (im2col with stride == kernel, valid padding) ----
    x = pixel_values.reshape(B, C, Hp, P, Wp, P)
    x = jnp.transpose(x, (0, 2, 4, 1, 3, 5))              # (B, Hp, Wp, C, P, P)
    patches = x.reshape(B, Np, K)                         # row-major (hp, wp)

    # ---- glue: weight (D, C, P, P) -> (K, D), once per call ----
    w_kd = w.reshape(D, K).T
    bias = params["b_patch"].reshape(1, D)
    # positions = arange(Np) -> identity gather of the embedding table.
    pos = params["pos_table"][:Np]                        # (Np, D)

    # Tile sizes: as large as evenly divides the problem (falls back to the
    # full dim — allowed by Mosaic even when not (8,128)-aligned).  Sublane
    # dim (tm) needs multiples of 8; lane dims (tn, tk) multiples of 128.
    # At real PaliGemma shapes (Np=256, D=1152, K=588) this collapses the
    # inner grid to a single step per batch element.
    tm = _pick_tile(Np, (512, 256, 128, 64, 32, 16, 8))
    tn = _pick_tile(D, (1152, 1024, 768, 640, 512, 384, 256, 128))
    tk = _pick_tile(K, (1024, 768, 640, 512, 384, 256, 128))

    grid = (B, Np // tm, D // tn, K // tk)

    flops = 2 * B * Np * K * D
    bytes_accessed = 4 * (B * Np * K + K * D + D + Np * D + B * Np * D)

    return pl.pallas_call(
        _patch_embed_kernel,
        out_shape=jax.ShapeDtypeStruct((B, Np, D), pixel_values.dtype),
        grid=grid,
        in_specs=[
            pl.BlockSpec((None, tm, tk), lambda b, i, j, k: (b, i, k)),  # patches
            pl.BlockSpec((tk, tn), lambda b, i, j, k: (k, j)),           # W^T
            pl.BlockSpec((1, tn), lambda b, i, j, k: (0, j)),            # bias
            pl.BlockSpec((tm, tn), lambda b, i, j, k: (i, j)),           # pos emb
        ],
        out_specs=pl.BlockSpec((None, tm, tn), lambda b, i, j, k: (b, i, j)),
        scratch_shapes=[pltpu.VMEM((tm, tn), jnp.float32)],
        compiler_params=pltpu.CompilerParams(
            dimension_semantics=("parallel", "parallel", "parallel", "arbitrary"),
            vmem_limit_bytes=48 * 1024 * 1024),   # headroom on v7x 64MiB, lifts v5e default
        cost_estimate=pl.CostEstimate(
            flops=flops, transcendentals=0, bytes_accessed=bytes_accessed),
    )(patches, w_kd, bias, pos)


# ----------------------------- reference ------------------------------------


def siglip_vision_embeddings_ref(pixel_values, params, patch_size):
    conv = jax.lax.conv_general_dilated(
        pixel_values, params["w_patch"],
        window_strides=(patch_size, patch_size), padding="VALID",
        dimension_numbers=("NCHW", "OIHW", "NCHW"))
    conv = conv + params["b_patch"].reshape(1, -1, 1, 1)
    B, D, Hp, Wp = conv.shape
    patch_embed = jnp.transpose(conv.reshape(B, D, Hp * Wp), (0, 2, 1))
    return patch_embed + params["pos_table"][: Hp * Wp][None]


# ------------------------------- main ----------------------------------------


if __name__ == "__main__":
    # Small but module-consistent shapes: B=2, C=3, image=16, patch=4, D=32.
    B, C, IMG, P, D = 2, 3, 16, 4, 32
    Np = (IMG // P) ** 2

    key = jax.random.PRNGKey(0)
    kx, kw, kb, kp = jax.random.split(key, 4)
    pixel_values = jax.random.normal(kx, (B, C, IMG, IMG), dtype=jnp.float32)
    params = {
        "w_patch": jax.random.normal(kw, (D, C, P, P), dtype=jnp.float32) * 0.05,
        "b_patch": jax.random.normal(kb, (D,), dtype=jnp.float32) * 0.01,
        "pos_table": jax.random.normal(kp, (Np, D), dtype=jnp.float32) * 0.02,
    }

    # Jit the wrapper so the host-side reshape/transpose glue fuses with the
    # pallas_call into one compiled program (no extra materialized copies).
    fn = jax.jit(siglip_vision_embeddings, static_argnames=("patch_size",))

    out = fn(pixel_values, params, patch_size=P)
    out = jax.block_until_ready(out)

    ref = siglip_vision_embeddings_ref(pixel_values, params, patch_size=P)
    assert out.shape == (B, Np, D), out.shape
    assert jnp.allclose(out, ref, atol=1e-4, rtol=1e-4), (
        f"max abs err {jnp.max(jnp.abs(out - ref))}")

    print("KERNEL_OK")
</pallas_src>

<mosaic_0001>
module attributes {stable_mosaic.version = 11 : i64} {
  func.func @_patch_embed_kernel(%arg0: i32, %arg1: i32, %arg2: i32, %arg3: i32, %arg4: memref<1x16x48xf32, #tpu.memory_space<vmem>>, %arg5: memref<48x32xf32, #tpu.memory_space<vmem>>, %arg6: memref<1x32xf32, #tpu.memory_space<vmem>>, %arg7: memref<16x32xf32, #tpu.memory_space<vmem>>, %arg8: memref<1x16x32xf32, #tpu.memory_space<vmem>>, %arg9: memref<16x32xf32, #tpu.memory_space<vmem>>) attributes {dimension_semantics = [#tpu.dimension_semantics<parallel>, #tpu.dimension_semantics<parallel>, #tpu.dimension_semantics<parallel>, #tpu.dimension_semantics<arbitrary>], iteration_bounds = array<i64: 2, 1, 1, 1>, scalar_prefetch = 0 : i64, scratch_operands = 1 : i64, tpu.core_type = #tpu.core_type<tc>, window_params = [{transform_indices = @transform_0, window_bounds = array<i64: 1, 16, 48>}, {transform_indices = @transform_1, window_bounds = array<i64: 48, 32>}, {transform_indices = @transform_2, window_bounds = array<i64: 1, 32>}, {transform_indices = @transform_3, window_bounds = array<i64: 16, 32>}, {transform_indices = @transform_4, window_bounds = array<i64: 1, 16, 32>}]} {
    %c0_i32 = arith.constant 0 : i32
    %0 = arith.cmpi eq, %arg3, %c0_i32 : i32
    %1 = arith.extui %0 : i1 to i32
    %c0_i32_0 = arith.constant 0 : i32
    %2 = arith.cmpi ne, %1, %c0_i32_0 : i32
    scf.if %2 {
      %cst_11 = arith.constant 0.000000e+00 : f32
      %13 = vector.broadcast %cst_11 : f32 to vector<16x32xf32>
      %c0_12 = arith.constant 0 : index
      %c0_13 = arith.constant 0 : index
      %14 = vector.load %arg9[%c0_12, %c0_13] : memref<16x32xf32, #tpu.memory_space<vmem>>, vector<16x32xf32>
      tpu.vector_store %arg9[%c0_12, %c0_13], %13 {strides = array<i32>} : memref<16x32xf32, #tpu.memory_space<vmem>>, vector<16x32xf32>,
    } else {
    }
    %c0 = arith.constant 0 : index
    %c0_1 = arith.constant 0 : index
    %3 = vector.load %arg9[%c0, %c0_1] : memref<16x32xf32, #tpu.memory_space<vmem>>, vector<16x32xf32>
    %c0_2 = arith.constant 0 : index
    %c0_3 = arith.constant 0 : index
    %c0_4 = arith.constant 0 : index
    %4 = vector.load %arg4[%c0_2, %c0_3, %c0_4] : memref<1x16x48xf32, #tpu.memory_space<vmem>>, vector<1x16x48xf32>
    %5 = vector.shape_cast %4 : vector<1x16x48xf32> to vector<16x48xf32>
    %c0_5 = arith.constant 0 : index
    %c0_6 = arith.constant 0 : index
    %6 = vector.load %arg5[%c0_5, %c0_6] : memref<48x32xf32, #tpu.memory_space<vmem>>, vector<48x32xf32>
    %cst = arith.constant dense<0.000000e+00> : vector<16x32xf32>
    %7 = tpu.matmul %5, %6, %cst {dimension_numbers = #tpu.dot_dimension_numbers<[1], [0], [0], [1], [0, 0, 1, 1], [], []>} : vector<16x48xf32>, vector<48x32xf32>, vector<16x32xf32> -> vector<16x32xf32>
    %8 = arith.addf %3, %7 : vector<16x32xf32>
    %c0_7 = arith.constant 0 : index
    %c0_8 = arith.constant 0 : index
    %9 = vector.load %arg9[%c0_7, %c0_8] : memref<16x32xf32, #tpu.memory_space<vmem>>, vector<16x32xf32>
    tpu.vector_store %arg9[%c0_7, %c0_8], %8 {strides = array<i32>} : memref<16x32xf32, #tpu.memory_space<vmem>>, vector<16x32xf32>,
    %c0_i32_9 = arith.constant 0 : i32
    %10 = arith.cmpi eq, %arg3, %c0_i32_9 : i32
    %11 = arith.extui %10 : i1 to i32
    %c0_i32_10 = arith.constant 0 : i32
    %12 = arith.cmpi ne, %11, %c0_i32_10 : i32
    scf.if %12 {
      %c0_11 = arith.constant 0 : index
      %c0_12 = arith.constant 0 : index
      %13 = vector.load %arg9[%c0_11, %c0_12] : memref<16x32xf32, #tpu.memory_space<vmem>>, vector<16x32xf32>
      %c0_13 = arith.constant 0 : index
      %c0_14 = arith.constant 0 : index
      %14 = vector.load %arg6[%c0_13, %c0_14] : memref<1x32xf32, #tpu.memory_space<vmem>>, vector<1x32xf32>
      %15 = vector.broadcast %14 : vector<1x32xf32> to vector<16x32xf32>
      %16 = arith.addf %13, %15 : vector<16x32xf32>
      %c0_15 = arith.constant 0 : index
      %c0_16 = arith.constant 0 : index
      %17 = vector.load %arg7[%c0_15, %c0_16] : memref<16x32xf32, #tpu.memory_space<vmem>>, vector<16x32xf32>
      %18 = arith.addf %16, %17 : vector<16x32xf32>
      %c0_17 = arith.constant 0 : index
      %c0_18 = arith.constant 0 : index
      %c0_19 = arith.constant 0 : index
      %19 = vector.load %arg8[%c0_17, %c0_18, %c0_19] : memref<1x16x32xf32, #tpu.memory_space<vmem>>, vector<1x16x32xf32>
      %20 = vector.shape_cast %19 : vector<1x16x32xf32> to vector<16x32xf32>
      %21 = vector.shape_cast %18 : vector<16x32xf32> to vector<1x16x32xf32>
      tpu.vector_store %arg8[%c0_17, %c0_18, %c0_19], %21 {strides = array<i32>} : memref<1x16x32xf32, #tpu.memory_space<vmem>>, vector<1x16x32xf32>,
    } else {
    }
    return
  }
  func.func @transform_0(%arg0: i32, %arg1: i32, %arg2: i32, %arg3: i32) -> (i32, i32, i32) {
    %c0_i32 = arith.constant 0 : i32
    return %arg0, %arg1, %arg3 : i32, i32, i32
  }
  func.func @transform_1(%arg0: i32, %arg1: i32, %arg2: i32, %arg3: i32) -> (i32, i32) {
    %c0_i32 = arith.constant 0 : i32
    return %arg3, %arg2 : i32, i32
  }
  func.func @transform_2(%arg0: i32, %arg1: i32, %arg2: i32, %arg3: i32) -> (i32, i32) {
    %c0_i32 = arith.constant 0 : i32
    %c0_i32_0 = arith.constant 0 : i32
    return %c0_i32, %arg2 : i32, i32
  }
  func.func @transform_3(%arg0: i32, %arg1: i32, %arg2: i32, %arg3: i32) -> (i32, i32) {
    %c0_i32 = arith.constant 0 : i32
    return %arg1, %arg2 : i32, i32
  }
  func.func @transform_4(%arg0: i32, %arg1: i32, %arg2: i32, %arg3: i32) -> (i32, i32, i32) {
    %c0_i32 = arith.constant 0 : i32
    return %arg0, %arg1, %arg2 : i32, i32, i32
  }
}

</mosaic_0001>

<bundles_post_ra>
// kernel: siglip_vision_embeddings.1
= control target key start
LH: loop header
LB: loop body
LE: loop exit
PB: predicated region body
PF: predicated region fallthrough
CT: control target
= control target key end

     0   :  { %9 = vsyncpa [#allocation4], 0  ;;  %s882_s0 = inlined_call_operand.vmem [shape: f32[2,16,48], index: 0, kind: input, shape index: {}]   ;;  %s883_s1 = inlined_call_operand.vmem [shape: f32[48,32], index: 1, kind: input, shape index: {}]   ;;  %s884_s2 = inlined_call_operand.vmem [shape: f32[1,32], index: 2, kind: input, shape index: {}]   ;;  %s885_s3 = inlined_call_operand.vmem [shape: f32[16,32], index: 3, kind: input, shape index: {}]   ;;  %s886_s4 = inlined_call_operand.hbm [shape: f32[2,16,32], index: 4, kind: output, shape index: {}]  }
   0x1   :  { %11 = vsyncpa [#allocation4 + $0x1], 0  ;;  %s752_s15 = smov 0   ;;  %s754_s16 = smov 0  }
   0x2   :  { %s756_s17 = smov 0   ;;  %s758_s18 = smov 0  }
   0x3   :  { %s760_s19 = smov 0   ;;  %s762_s20 = smov 0  }
   0x4 LB: > { %s559_s21 = sadd.s32 4294967295, %s722_s20   ;;  %s560_s22 = sadd.s32 4294967294, %s722_s20   ;;  %s722_s20 = sphi %s762_s20, %s17_s20   ;;  %s718_s19 = sphi %s760_s19, %s893_s19   ;;  %s714_s18 = sphi %s758_s18, %s892_s18   ;;  %s710_s17 = sphi %s756_s17, %s891_s17   ;;  %s706_s16 = sphi %s754_s16, %s890_s16   ;;  %s702_s15 = sphi %s752_s15, %s889_s15  }
   0x5   : > { %s43_s23 = sadd.s32 1, %s718_s19  ;;  %s166_s24 = sadd.s32 1, %s710_s17 }
   0x6   : > { %p45_p0 = scmp.ge.s32.totalorder %s43_s23, 2  ;;  %p176_p1 = scmp.ne.s32.totalorder %s710_s17, %s706_s16 }
   0x7   : > { %p177_p2 = scmp.eq.s32.totalorder %s559_s21, 1  ;;  %p182_p3 = scmp.ne.s32.totalorder %s706_s16, %s702_s15 }
   0x8   : > { %s895_s23 = smov (%p45_p0, %s43_s23), 0  ;;  %p183_p5 = scmp.eq.s32.totalorder %s560_s22, 1 }
   0x9   : > { %p792_p4 = por %p177_p2, %p176_p1  ;;  %s159_s26 = ssub.s32 %s718_s19, %s895_s23 }
   0xa   : > { %p566_p6 = scmp.ge.s32.totalorder %s722_s20, 1  ;;  %p164_p7 = scmp.eq.s32.totalorder %s159_s26, 0 }
   0xb   : > { %p799_p8 = por %p183_p5, %p182_p3  ;;  %p247_p9 = scmp.lt.s32.totalorder %s722_s20, 3 }
   0xc   : > { %s805_s28 = scalar_select %p164_p7, %s710_s17, %s166_s24  }
   0xd   : > { %p248_p10 = pnand %p566_p6, %p247_p9 }
   0xe   : > { %p300_p11 = scmp.lt.s32.totalorder (!%p248_p10), %s714_s18, 1  ;;  %s296_s30 = sand.u32 (!%p248_p10), 1, %s706_s16  }
   0xf   : > { %251 = sbr.rel (%p248_p10) target bundleno = 177 (0xb1), region = 36  ;;  %s567_s5 = sshll.u32 (!%p248_p10), %s296_s30, 4 }
  0x10   : > { %s578_s6 = sshll.u32 (!%p248_p10), %s714_s18, 4  ;;  %s298_s14 = scalar_lea.vmem (!%p248_p10), [#allocation3], %s567_s5 }
  0x11   : > { %s418_s11 = scalar_lea.hbm (!%p248_p10), %s886_s4, %s578_s6  ;;  %s419_s21 = sshll.u32 (!%p248_p10), %s298_s14, 4  ;;  %s420_s21 = int_to_ptr.vmem [resolvable:$true] %s419_s21 }
  0x12   : > { %s421_s22 = sshll.u32 (!%p248_p10), %s418_s11, 4  ;;  %s404_s26 = scalar_lea.sflag (!%p248_p10), [#allocation4], %s296_s30  ;;  %s422_s22 = int_to_ptr.hbm [resolvable:$true] %s421_s22 }
  0x13   : > { %s658_s29 = sshra.s32 (!%p248_p10), %s422_s22, 4  ;;  %s664_s8 = scalar_lea.hbm (!%p248_p10), %s886_s4, 32  ;;  %s659_s29 = int_to_ptr.hbm [resolvable:$true] %s658_s29 }
  0x14   : > { %v350_v0 = vld [vmem:[%s883_s1 + $0x28] sm:$0xff]  ;;  %v349_v1 = vld [vmem:[%s883_s1 + $0x20] sm:$0xff]  ;;  %vm338_vm0 = vcmask 261120   ;;  %v348_v2 = vld [vmem:[%s883_s1 + $0x18] sm:$0xff]  ;;  %s301_s9 = scalar_select %p300_p11, %s714_s18, 1  ;;  %v724_v3 = vmov 0.0  }
  0x15   : > { %368 = vmatpush.msra.mxu0 %v350_v0  ;;  %579 = vmatpush.msra.mxu1 %v350_v0  ;;  %339 = vst.msk [vmem:[#allocation2] sm:$0xff] %vm338_vm0, %v724_v3  ;;  %v347_v4 = vld [vmem:[%s883_s1 + $0x10] sm:$0xff]  ;;  %v346_v5 = vld [vmem:[%s883_s1 + $0x8] sm:$0xff]  ;;  %v345_v6 = vld [vmem:[%s883_s1] sm:$0xff]  ;;  %vm351_vm1 = vcmask 392192   ;;  %s660_s5 = scalar_lea.hbm %s659_s29, 16  ;;  %p665_p1 = scmp.lt.s32.totalorder %s659_s29, %s886_s4 }
  0x16   : > { %340 = vst.msk [vmem:[#allocation2 + $0x8] sm:$0xff] %vm338_vm0, %v724_v3  ;;  %s577_s12 = sshll.u32 %s301_s9, 4  ;;  %v643_v15 = vld [vmem:[%s884_s2] ss:$0 sm:$0xff]  ;;  %v398_v20 = vld [vmem:[%s885_s3 + $0x8] sm:$0xff]  ;;  %p661_p12 = scmp.ne.s32.totalorder %s659_s29, %s660_s5 }
  0x17   : > { %369 = vmatpush.msra.mxu0 %v349_v1  ;;  %580 = vmatpush.msra.mxu1 %v349_v1  ;;  %s310_s24 = scalar_lea.vmem %s882_s0, %s577_s12  ;;  %v397_v17 = vld [vmem:[%s885_s3] sm:$0xff]  ;;  %p666_p2 = scmp.lt.s32.totalorder %s664_s8, %s660_s5 }
  0x18   : > { %v343_v7 = vld [vmem:[%s310_s24] sm:$0xff]  ;;  %v344_v8 = vld [vmem:[%s310_s24 + $0x8] sm:$0xff]  ;;  %p662_p13 = pnand %p661_p12, %p792_p4 }
  0x19   : > { %370 = vmatpush.msra.mxu0 %v348_v2  ;;  %581 = vmatpush.msra.mxu1 %v348_v2  ;;  %p667_p3 = por %p666_p2, %p665_p1 }
  0x1a   : > { %p663_p0 = pneg %p662_p13 }
  0x1b   : > { %371 = vmatpush.msra.mxu0 %v347_v4  ;;  %582 = vmatpush.msra.mxu1 %v347_v4 }
  0x1c   : > { %v341_v9 = vld [vmem:[#allocation2] sm:$0xff]  ;;  %p668_p5 = pnand %p667_p3, %p663_p0 }
  0x1d   : > { %372 = vmatpush.msra.mxu0 %v346_v5  ;;  %583 = vmatpush.msra.mxu1 %v346_v5  ;;  %v342_v10 = vld [vmem:[#allocation2 + $0x8] sm:$0xff] }
  0x1f   : > { %373 = vmatpush.msra.mxu0 %v345_v6  ;;  %584 = vmatpush.msra.mxu1 %v345_v6 }
  0x20   : > { %570 = vmatmul.msk.f32.vlgmr.msra.gmra.mxu0 %vm351_vm1, %v343_v7  ;;  %571 = vmatmul.msk.f32.vlgmr.msra.gmra.mxu1 %vm351_vm1, %v344_v8 }
  0x9d   : > { %v375_v11 = vpop.f32.mrf.mxu0  ;;  %v378_v12 = vpop.f32.mrf.mxu1 }
  0x9e   : > { %v381_v13 = vadd.f32 %v375_v11, %v341_v9  ;;  %v382_v14 = vadd.f32 %v378_v12, %v342_v10 }
  0xa0   : > { %384 = vst.msk [vmem:[#allocation2] sm:$0xff] %vm338_vm0, %v381_v13 }
  0xa1   : > { %385 = vst.msk [vmem:[#allocation2 + $0x8] sm:$0xff] %vm338_vm0, %v382_v14 }
  0xa7   : > { %v389_v16 = vld [vmem:[#allocation2] sm:$0xff] }
  0xa8   : > { %v390_v18 = vld [vmem:[#allocation2 + $0x8] sm:$0xff]  ;;  %v395_v19 = vadd.f32 %v643_v15, %v389_v16 }
  0xa9   : > { %v396_v21 = vadd.f32 %v643_v15, %v390_v18 }
  0xaa   : > { %v399_v22 = vadd.f32 %v397_v17, %v395_v19 }
  0xab   : > { %v400_v23 = vadd.f32 %v398_v20, %v396_v21 }
  0xac   : > { %401 = vst.msk [vmem:[%s298_s14] sm:$0xff] %vm338_vm0, %v399_v22 }
  0xad   : > { %402 = vst.msk [vmem:[%s298_s14 + $0x8] sm:$0xff] %vm338_vm0, %v400_v23 }
  0xae   : > { %671 = shalt.err (!%p668_p5)
}
  0xaf   : > { %s725_s30 = smov 128   ;;  %s726_s11 = smov 8  }
  0xb0   : > { %585 = dma.vmem_to_hbm [thread:$0]  (%p792_p4), %s420_s21, 256, %s422_s22, %s404_s26, %s725_s30, %s725_s30, %s726_s11  }
  0xb1 PF: > { %p591_p6 = scmp.ge.s32.totalorder %s722_s20, 2  ;;  %s436_s12 = sand.u32 1, %s702_s15  }
  0xb2   : > { %s437_s13 = scalar_lea.sflag [#allocation4], %s436_s12 }
  0xb3   : > { %p588_p7 = pnand %p591_p6, %p799_p8 }
  0xb5   : > { %p589_p9 = pneg %p588_p7 }
  0xb7   : > { %697 = dma.done.wait (%p589_p9), %s437_s13, 256  }
  0xb8   : > { %699 = vsyncadd (%p589_p9), %s437_s13, 4294967040  ;;  %s17_s20 = sadd.s32 1, %s722_s20   ;;  %s889_s15 = smov %s706_s16 }
  0xb9   : > { %p14_p10 = scmp.ge.s32.totalorder %s17_s20, 4   ;;  %s890_s16 = smov %s710_s17 }
  0xba   : > { %s891_s17 = smov %s805_s28  ;;  %s892_s18 = smov %s718_s19 }
  0xbb   : > { %s893_s19 = smov %s895_s23  ;;  %16 = sbr.rel (!%p14_p10) target bundleno = 4 (0x4), region = 88 }
  0xc0   :  { %443 = vsyncpa [#allocation4], 1 }
  0xc1   :  { %445 = vsyncpa [#allocation4 + $0x1], 1 }

</bundles_post_ra>
